<compile_context>
chip_gen: v7x
topology: tpu7x:2x2x1
jax: 0.10.0
libtpu: 0.0.40
codegen_flags: <defaults>
</compile_context>

<pallas_src>
import jax
import jax.numpy as jnp
from jax.experimental import pallas as pl
from jax.experimental.pallas import tpu as pltpu  # noqa: F401  (TPU backend params if needed)


def _nop_kernel(x_ref, o_ref):
    # Output is aliased to the input (input_output_aliases={0: 0}) and both
    # refs are raw HBM refs (memory_space=pl.ANY): there is nothing to copy,
    # nothing to DMA, nothing to compute.  Pure launch overhead.
    del x_ref, o_ref


def _nop_pallas(x):
    return pl.pallas_call(
        _nop_kernel,
        out_shape=jax.ShapeDtypeStruct(x.shape, x.dtype),
        # ANY memory space => no auto-DMA pipeline, kernel sees raw HBM refs.
        in_specs=[pl.BlockSpec(memory_space=pl.ANY)],
        out_specs=pl.BlockSpec(memory_space=pl.ANY),
        # Output buffer IS the input buffer -> empty body is a correct identity.
        input_output_aliases={0: 0},
    )(x)


@jax.jit
def nop_forward(x):
    """Forward pass of the PyTorch `nop` module: return x unchanged."""
    if x.size == 0:            # static shape check; nothing to launch
        return x
    return _nop_pallas(x)


if __name__ == "__main__":
    key = jax.random.PRNGKey(0)

    # Small NCHW input consistent with a typical conv-style module call.
    x = jax.random.normal(key, (2, 4, 16, 16), dtype=jnp.float32)
    y = jax.block_until_ready(nop_forward(x))
    assert y.shape == x.shape
    assert y.dtype == x.dtype
    assert bool(jnp.all(y == x))

    # Odd, non-(8,128)-aligned shape + bf16: no padding/slicing needed on the
    # ANY-memory-space path.
    x2 = jax.random.normal(jax.random.PRNGKey(1), (3, 5, 7), dtype=jnp.bfloat16)
    y2 = jax.block_until_ready(nop_forward(x2))
    assert y2.shape == x2.shape
    assert y2.dtype == x2.dtype
    assert bool(jnp.all(y2 == x2))

    print("KERNEL_OK")
</pallas_src>

<mosaic_0001>
module attributes {stable_mosaic.version = 11 : i64} {
  func.func @_nop_kernel(%arg0: memref<2x4x16x16xf32, #tpu.memory_space<any>>, %arg1: memref<2x4x16x16xf32, #tpu.memory_space<any>>) attributes {dimension_semantics = [], scalar_prefetch = 0 : i64, scratch_operands = 0 : i64, tpu.core_type = #tpu.core_type<tc>} {
    return
  }
}

</mosaic_0001>

<bundles_post_ra>
// kernel: nop_forward.1
= control target key start
LH: loop header
LB: loop body
LE: loop exit
PB: predicated region body
PF: predicated region fallthrough
CT: control target
= control target key end

     0   :  { %s16_s0 = inlined_call_operand.hbm [shape: f32[2,4,16,16], index: 0, kind: input, shape index: {}, may-alias: {0,1}]   ;;  %s17_s1 = inlined_call_operand.hbm [shape: f32[2,4,16,16], index: 1, kind: output, shape index: {}, may-alias: {0,1}]  }

</bundles_post_ra>
